<compile_context>
chip_gen: v7x
topology: tpu7x:2x2x1
jax: 0.10.0
libtpu: 0.0.40
codegen_flags: <defaults>
</compile_context>

<pallas_src>
import jax
import jax.numpy as jnp
from jax.experimental import pallas as pl
from jax.experimental.pallas import tpu as pltpu


def _row_chunks(rows, total_bytes, max_chunks=8, target_chunk_bytes=4 * 1024 * 1024):
    """Split `rows` into <= max_chunks contiguous, non-empty (start, size) chunks.

    Small arrays get a single chunk (one DMA); large arrays get up to
    `max_chunks` chunks of roughly `target_chunk_bytes` each so several DMA
    engines can run concurrently.
    """
    desired = max(1, total_bytes // target_chunk_bytes)
    n = max(1, min(max_chunks, rows, desired))
    base, rem = divmod(rows, n)
    chunks = []
    lo = 0
    for i in range(n):
        sz = base + (1 if i < rem else 0)
        if sz > 0:
            chunks.append((lo, sz))
            lo += sz
    return chunks


def _make_dma_copy_kernel(chunks):
    """Kernel factory: pure HBM->HBM DMA copy of a (rows, cols) array."""

    def kernel(x_hbm, o_hbm, sems):
        # Start every chunk's DMA first, then wait on all of them, so the
        # copies overlap across DMA engines (no VMEM / vreg round-trip).
        copies = []
        for i, (lo, sz) in enumerate(chunks):  # static Python loop
            cp = pltpu.make_async_copy(
                x_hbm.at[pl.ds(lo, sz), :],
                o_hbm.at[pl.ds(lo, sz), :],
                sems.at[i],
            )
            cp.start()
            copies.append(cp)
        for cp in copies:
            cp.wait()

    return kernel


def channel_selection_forward(x, indexes):
    """Pallas implementation of channel_selection.forward (identity copy).

    Args:
      x: (N, C, H, W) array (output of a BatchNorm2d layer).
      indexes: (C,) pruning-mask parameter.  Kept for API fidelity; the
        reference forward does not use it to modify the output.

    Returns:
      Array identical to `x` (shape and dtype preserved).
    """
    del indexes  # forward() returns input_tensor[:, :, :, :] — identity.
    N, C, H, W = x.shape
    rows, cols = N * C, H * W
    total_bytes = x.size * x.dtype.itemsize
    chunks = _row_chunks(rows, total_bytes)

    # Lane-dense, contiguous 2D view; free reshape for NCHW-contiguous data.
    x2d = x.reshape(rows, cols)

    out2d = pl.pallas_call(
        _make_dma_copy_kernel(chunks),
        out_shape=jax.ShapeDtypeStruct((rows, cols), x.dtype),
        in_specs=[pl.BlockSpec(memory_space=pl.ANY)],   # raw HBM ref, no auto-DMA
        out_specs=pl.BlockSpec(memory_space=pl.ANY),    # written directly by DMA
        scratch_shapes=[pltpu.SemaphoreType.DMA((len(chunks),))],
    )(x2d)

    return out2d.reshape(N, C, H, W)


if __name__ == "__main__":
    # Small shapes consistent with the module: N=2, C=4, H=W=16.
    N, C, H, W = 2, 4, 16, 16
    key = jax.random.PRNGKey(0)
    x = jax.random.normal(key, (N, C, H, W), dtype=jnp.float32)

    # Deterministic parameter init, matching nn.Parameter(torch.ones(C)).
    indexes = jnp.ones((C,), dtype=jnp.float32)

    out = channel_selection_forward(x, indexes)
    out = jax.block_until_ready(out)

    # Correctness check against the reference semantics (identity).
    assert out.shape == x.shape and out.dtype == x.dtype
    assert bool(jnp.all(out == x))

    print("KERNEL_OK")
</pallas_src>

<mosaic_0001>
module attributes {stable_mosaic.version = 11 : i64} {
  func.func @kernel(%arg0: memref<8x256xf32, #tpu.memory_space<any>>, %arg1: memref<8x256xf32, #tpu.memory_space<any>>, %arg2: memref<1x!tpu.dma_semaphore, #tpu.memory_space<semaphore_mem>>) attributes {dimension_semantics = [], scalar_prefetch = 0 : i64, scratch_operands = 1 : i64, tpu.core_type = #tpu.core_type<tc>} {
    %c0_i32 = arith.constant 0 : i32
    %c0_i32_0 = arith.constant 0 : i32
    %c0_i32_1 = arith.constant 0 : i32
    %0 = tpu.memref_slice %arg0[%c0_i32_0, %c0_i32_1] : memref<8x256xf32, #tpu.memory_space<any>> -> memref<8x256xf32, #tpu.memory_space<any>>
    %c0_i32_2 = arith.constant 0 : i32
    %c0_i32_3 = arith.constant 0 : i32
    %1 = tpu.memref_slice %arg1[%c0_i32_2, %c0_i32_3] : memref<8x256xf32, #tpu.memory_space<any>> -> memref<8x256xf32, #tpu.memory_space<any>>
    %2 = tpu.memref_slice %arg2[%c0_i32] : memref<1x!tpu.dma_semaphore, #tpu.memory_space<semaphore_mem>> -> memref<1x!tpu.dma_semaphore, #tpu.memory_space<semaphore_mem>>
    %3 = tpu.memref_squeeze %2 : memref<1x!tpu.dma_semaphore, #tpu.memory_space<semaphore_mem>> -> memref<!tpu.dma_semaphore, #tpu.memory_space<semaphore_mem>>
    tpu.enqueue_dma source(%0 : memref<8x256xf32, #tpu.memory_space<any>>) target(%1 : memref<8x256xf32, #tpu.memory_space<any>>) target_semaphore(%3 : memref<!tpu.dma_semaphore, #tpu.memory_space<semaphore_mem>>)
    %c0_i32_4 = arith.constant 0 : i32
    %c0_i32_5 = arith.constant 0 : i32
    %c0_i32_6 = arith.constant 0 : i32
    %4 = tpu.memref_slice %arg0[%c0_i32_5, %c0_i32_6] : memref<8x256xf32, #tpu.memory_space<any>> -> memref<8x256xf32, #tpu.memory_space<any>>
    %c0_i32_7 = arith.constant 0 : i32
    %c0_i32_8 = arith.constant 0 : i32
    %5 = tpu.memref_slice %arg1[%c0_i32_7, %c0_i32_8] : memref<8x256xf32, #tpu.memory_space<any>> -> memref<8x256xf32, #tpu.memory_space<any>>
    %6 = tpu.memref_slice %arg2[%c0_i32_4] : memref<1x!tpu.dma_semaphore, #tpu.memory_space<semaphore_mem>> -> memref<1x!tpu.dma_semaphore, #tpu.memory_space<semaphore_mem>>
    %7 = tpu.memref_squeeze %6 : memref<1x!tpu.dma_semaphore, #tpu.memory_space<semaphore_mem>> -> memref<!tpu.dma_semaphore, #tpu.memory_space<semaphore_mem>>
    tpu.wait_dma2 semaphore(%7 : memref<!tpu.dma_semaphore, #tpu.memory_space<semaphore_mem>>) src(%4 : memref<8x256xf32, #tpu.memory_space<any>>) dst(%5 : memref<8x256xf32, #tpu.memory_space<any>>)
    return
  }
}

</mosaic_0001>

<bundles_post_ra>
// kernel: tpu_custom_call.1
= control target key start
LH: loop header
LB: loop body
LE: loop exit
PB: predicated region body
PF: predicated region fallthrough
CT: control target
= control target key end

     0   :  { %s35_s6 = smov [#allocation2]   ;;  %s36_s7 = smov [#allocation3]   ;;  %s54_s0 = inlined_call_operand.hbm [shape: f32[8,256], index: 0, kind: input, shape index: {}]   ;;  %s55_s1 = inlined_call_operand.hbm [shape: f32[8,256], index: 1, kind: output, shape index: {}]  }
   0x1   :  { %s37_s8 = smov 0  }
   0x2   :  { %18 = dma.general %s54_s0, 256, %s55_s1, %s35_s6, %s36_s7, [#allocation4], %s37_s8, 0  }
   0x3   :  { %33 = dma.done.wait [#allocation2], 256 }
   0x4   :  { %34 = vsyncadd [#allocation2], 4294967040 }
   0x5   :  { %23 = vsyncmov [#allocation2] }
   0x8   :  { %s24_s13 = vpop.sfrf %23 }
   0x9   :  { %p29_p0 = scmp.ne.s32.totalorder %s24_s13, 0 }
   0xb   :  { %28 = shalt.err (%p29_p0)  }

</bundles_post_ra>
